<compile_context>
chip_gen: v7x
topology: tpu7x:2x2x1
jax: 0.10.0
libtpu: 0.0.40
codegen_flags: <defaults>
</compile_context>

<pallas_src>
import functools

import jax
import jax.numpy as jnp
from jax.experimental import pallas as pl
from jax.experimental.pallas import tpu as pltpu


def _round_up(a, b):
    return ((a + b - 1) // b) * b


def _ffn_kernel(x_ref, w1_ref, b1_ref, w2_ref, b2_ref, g_ref, beta_ref,
                o_ref, acc_ref, *, norm_eps, d_model):
    # x_ref: (tm, dpad); w1_ref: (dpad, tj) bf16; w2_ref: (tj, dpad) bf16;
    # b1: (1, tj) f32; b2/gamma/beta: (1, dpad) f32; acc_ref: (tm, dpad) f32.
    j = pl.program_id(1)
    nj = pl.num_programs(1)

    @pl.when(j == 0)
    def _init():
        # Seed the accumulator with residual + fc2 bias (j-invariant terms).
        acc_ref[...] = x_ref[...].astype(jnp.float32) + b2_ref[...]

    # fc1 tile: contract over (padded) d_model on the MXU, f32 accumulate.
    h = jnp.dot(x_ref[...].astype(w1_ref.dtype), w1_ref[...],
                preferred_element_type=jnp.float32)
    h = h + b1_ref[...]
    # Hardswish fused with the bf16 downcast so only one (tm, tj) copy of the
    # hidden tile stays live going into the second matmul.
    h = (h * jnp.clip(h + 3.0, 0.0, 6.0) * (1.0 / 6.0)).astype(w2_ref.dtype)

    # TODO(synk): dropout is identity here (inference); training-mode dropout
    # would use pltpu.prng_seed / pltpu.prng_random_bits.

    # fc2 partial contraction over this inner tile, accumulated in f32.
    acc_ref[...] += jnp.dot(h, w2_ref[...], preferred_element_type=jnp.float32)

    @pl.when(j == nj - 1)
    def _finalize():
        y = acc_ref[...]
        dpad = y.shape[-1]
        inv_d = 1.0 / d_model
        # Padded lanes of y are exactly zero (zero-padded x / W2 cols / b2),
        # so summing all lanes and dividing by the true d_model is the mean.
        mu = jnp.sum(y, axis=-1, keepdims=True) * inv_d
        d = y - mu
        if dpad != d_model:  # static branch: mask padded lanes out of the var
            lane = jax.lax.broadcasted_iota(jnp.int32, (1, dpad), 1)
            d = jnp.where(lane < d_model, d, 0.0)
        var = jnp.sum(d * d, axis=-1, keepdims=True) * inv_d
        yn = d * jax.lax.rsqrt(var + norm_eps)
        o_ref[...] = (yn * g_ref[...] + beta_ref[...]).astype(o_ref.dtype)


def _vmem_need_bytes(tm, tj, dpad, w_item, x_item, out_item, w_bufs):
    io = 2 * tm * dpad * (x_item + out_item)              # x + out (2 buffers)
    weights = w_bufs * (2 * dpad * tj * w_item + tj * 4)  # W1 + W2 + b1
    small = 3 * dpad * 4                                  # b2 / gamma / beta
    acc = tm * dpad * 4                                   # f32 accumulator
    # live intermediates: fc1 f32 + bf16 hidden + bf16 x cast + LN temps
    inter = tm * tj * (4 + 2) + tm * dpad * (2 + 2 * 4)
    return io + weights + small + acc + inter


def feed_forward(x, params, *, norm_eps=1e-12, tm=512, inner_tile=None,
                 matmul_dtype=jnp.bfloat16):
    """x: (batch, seq, d_model)."""
    w1, b1, w2, b2, gamma, beta = params
    batch, seq, d_model = x.shape
    inner = w1.shape[1]
    n = batch * seq

    x_item = jnp.dtype(x.dtype).itemsize
    w_item = jnp.dtype(matmul_dtype).itemsize

    # ---- VMEM budget (generation-aware: v7x has only 64 MiB per TC) -------
    try:
        vmem_cap = int(pltpu.get_tpu_info().vmem_capacity_bytes)
    except Exception:
        vmem_cap = 64 << 20
    budget = int(0.75 * vmem_cap)

    # ---- lane-dense padding of the feature dims ---------------------------
    dpad = _round_up(d_model, 128)
    inner_p = _round_up(inner, 128)

    # ---- row tile: 128-aligned; split when rows are moderate so the
    #      "parallel" axis has >= 2 steps (keeps both v7x TCs busy) ---------
    n8 = _round_up(n, 8)
    if n8 <= 256:
        tm_eff = n8
    elif n8 <= 2 * tm:
        tm_eff = min(_round_up((n8 + 1) // 2, 128), tm)
    else:
        tm_eff = tm

    # ---- inner tile: fully-resident weights when they fit, else tile ------
    def fits(tm_, tj_, bufs):
        return _vmem_need_bytes(tm_, tj_, dpad, w_item, x_item, x_item,
                                bufs) <= budget

    if inner_tile is not None:
        tj = min(_round_up(inner_tile, 128), inner_p)
    elif fits(tm_eff, inner_p, 1):
        tj = inner_p
    else:
        tj = inner_p
        splits = 1
        while not fits(tm_eff, tj, 2) and tj > 128:
            splits += 1
            tj = _round_up(pl.cdiv(inner_p, splits), 128)
        while not fits(tm_eff, tj, 2) and tm_eff > 128:
            tm_eff = max(128, _round_up(tm_eff // 2, 128))

    inner_pad = _round_up(inner_p, tj)
    kj = inner_pad // tj
    n_pad = _round_up(n8, tm_eff)
    gi = n_pad // tm_eff

    # ---- zero-padded operands (padded b1/gamma/beta MUST be exactly zero:
    #      hardswish(0)==0 so padded inner columns contribute nothing) ------
    x2d = x.reshape(n, d_model)
    if n_pad != n or dpad != d_model:
        x2d = jnp.pad(x2d, ((0, n_pad - n), (0, dpad - d_model)))
    w1p = jnp.pad(w1.astype(matmul_dtype),
                  ((0, dpad - d_model), (0, inner_pad - inner)))
    w2p = jnp.pad(w2.astype(matmul_dtype),
                  ((0, inner_pad - inner), (0, dpad - d_model)))
    b1p = jnp.pad(b1.astype(jnp.float32),
                  (0, inner_pad - inner)).reshape(1, inner_pad)
    b2p = jnp.pad(b2.astype(jnp.float32),
                  (0, dpad - d_model)).reshape(1, dpad)
    gp = jnp.pad(gamma.astype(jnp.float32),
                 (0, dpad - d_model)).reshape(1, dpad)
    bp = jnp.pad(beta.astype(jnp.float32),
                 (0, dpad - d_model)).reshape(1, dpad)

    # ---- accurate VMEM limit, never above ~90% of physical VMEM -----------
    need = _vmem_need_bytes(tm_eff, tj, dpad, w_item, x_item, x_item,
                            1 if kj == 1 else 2)
    vmem_limit = min(int(1.25 * need) + (2 << 20), int(0.9 * vmem_cap))
    vmem_limit = max(vmem_limit, 1 << 20)

    # ---- scheduler hints ---------------------------------------------------
    flops = 4 * n_pad * dpad * inner_pad
    weight_bytes = 2 * dpad * inner_pad * w_item
    bytes_accessed = (2 * n_pad * dpad * x_item
                      + weight_bytes * (gi if kj > 1 else 1)
                      + (inner_pad + 3 * dpad) * 4)
    transcendentals = n_pad  # one rsqrt per row

    def wspec(shape, imap):
        # Weights single-buffered when grid-invariant (kj == 1).
        if kj == 1:
            return pl.BlockSpec(shape, imap, pipeline_mode=pl.Buffered(1))
        return pl.BlockSpec(shape, imap)

    kernel = functools.partial(_ffn_kernel, norm_eps=norm_eps, d_model=d_model)

    out = pl.pallas_call(
        kernel,
        out_shape=jax.ShapeDtypeStruct((n_pad, dpad), x.dtype),
        grid_spec=pltpu.PrefetchScalarGridSpec(
            num_scalar_prefetch=0,
            grid=(gi, kj),
            in_specs=[
                pl.BlockSpec((tm_eff, dpad), lambda i, j: (i, 0)),       # x
                wspec((dpad, tj), lambda i, j: (0, j)),                  # W1
                wspec((1, tj), lambda i, j: (0, j)),                     # b1
                wspec((tj, dpad), lambda i, j: (j, 0)),                  # W2
                pl.BlockSpec((1, dpad), lambda i, j: (0, 0),
                             pipeline_mode=pl.Buffered(1)),              # b2
                pl.BlockSpec((1, dpad), lambda i, j: (0, 0),
                             pipeline_mode=pl.Buffered(1)),              # gamma
                pl.BlockSpec((1, dpad), lambda i, j: (0, 0),
                             pipeline_mode=pl.Buffered(1)),              # beta
            ],
            out_specs=pl.BlockSpec((tm_eff, dpad), lambda i, j: (i, 0)),
            scratch_shapes=[pltpu.VMEM((tm_eff, dpad), jnp.float32)],
        ),
        compiler_params=pltpu.CompilerParams(
            dimension_semantics=("parallel", "arbitrary"),
            vmem_limit_bytes=vmem_limit),
        cost_estimate=pl.CostEstimate(
            flops=flops, transcendentals=transcendentals,
            bytes_accessed=bytes_accessed),
    )(x2d, w1p, b1p, w2p, b2p, gp, bp)

    return out[:n, :d_model].reshape(batch, seq, d_model)


def init_params(key, d_model, inner_size):
    """Deterministic init mimicking nn.Linear's uniform(-1/sqrt(fan_in), ...)."""
    k1, k2, k3, k4 = jax.random.split(key, 4)
    lim1 = 1.0 / (d_model ** 0.5)
    lim2 = 1.0 / (inner_size ** 0.5)
    # Stored pre-transposed: (in_features, out_features)
    w1 = jax.random.uniform(k1, (d_model, inner_size), jnp.float32, -lim1, lim1)
    b1 = jax.random.uniform(k2, (inner_size,), jnp.float32, -lim1, lim1)
    w2 = jax.random.uniform(k3, (inner_size, d_model), jnp.float32, -lim2, lim2)
    b2 = jax.random.uniform(k4, (d_model,), jnp.float32, -lim2, lim2)
    gamma = jnp.ones((d_model,), jnp.float32)
    beta = jnp.zeros((d_model,), jnp.float32)
    return (w1, b1, w2, b2, gamma, beta)


def feed_forward_ref(x, params, norm_eps=1e-12):
    w1, b1, w2, b2, gamma, beta = params
    h = x @ w1 + b1
    h = h * jnp.clip(h + 3.0, 0.0, 6.0) / 6.0
    y = h @ w2 + b2 + x
    mu = jnp.mean(y, axis=-1, keepdims=True)
    var = jnp.mean((y - mu) ** 2, axis=-1, keepdims=True)
    return (y - mu) * jax.lax.rsqrt(var + norm_eps) * gamma + beta


if __name__ == "__main__":
    key = jax.random.PRNGKey(0)

    # --- case 1: module demo shape (sub-128 d_model -> lane padding path) --
    batch, seq, d_model, inner_size = 2, 8, 32, 64
    kx, kp, key = jax.random.split(key, 3)
    x = jax.random.normal(kx, (batch, seq, d_model), jnp.float32)
    params = init_params(kp, d_model, inner_size)
    out = jax.block_until_ready(feed_forward(x, params))
    ref = feed_forward_ref(x, params)
    assert out.shape == (batch, seq, d_model)
    # bf16 matmul operands (f32 accumulate) -> loosened tolerance vs f32 ref.
    assert jnp.allclose(out, ref, atol=5e-2, rtol=5e-2), "case1 mismatch"

    # --- case 2: force the inner-tiled accumulator path (kj > 1) -----------
    batch2, seq2, d_model2, inner2 = 2, 96, 128, 384
    kx2, kp2 = jax.random.split(key)
    x2 = jax.random.normal(kx2, (batch2, seq2, d_model2), jnp.float32)
    params2 = init_params(kp2, d_model2, inner2)
    out2 = jax.block_until_ready(feed_forward(x2, params2, inner_tile=128))
    ref2 = feed_forward_ref(x2, params2)
    assert out2.shape == (batch2, seq2, d_model2)
    assert jnp.allclose(out2, ref2, atol=5e-2, rtol=5e-2), "case2 mismatch"

    print("KERNEL_OK")
</pallas_src>

<mosaic_0001>
module attributes {stable_mosaic.version = 11 : i64} {
  func.func @_ffn_kernel(%arg0: i32, %arg1: i32, %arg2: memref<16x128xf32, #tpu.memory_space<vmem>>, %arg3: memref<128x128xbf16, #tpu.memory_space<vmem>>, %arg4: memref<1x128xf32, #tpu.memory_space<vmem>>, %arg5: memref<128x128xbf16, #tpu.memory_space<vmem>>, %arg6: memref<1x128xf32, #tpu.memory_space<vmem>>, %arg7: memref<1x128xf32, #tpu.memory_space<vmem>>, %arg8: memref<1x128xf32, #tpu.memory_space<vmem>>, %arg9: memref<16x128xf32, #tpu.memory_space<vmem>>, %arg10: memref<16x128xf32, #tpu.memory_space<vmem>>) attributes {dimension_semantics = [#tpu.dimension_semantics<parallel>, #tpu.dimension_semantics<arbitrary>], iteration_bounds = array<i64: 1, 1>, scalar_prefetch = 0 : i64, scratch_operands = 1 : i64, tpu.core_type = #tpu.core_type<tc>, window_params = [{transform_indices = @transform_0, window_bounds = array<i64: 16, 128>}, {pipeline_mode = #tpu.pipeline_mode<synchronous>, transform_indices = @transform_1, window_bounds = array<i64: 128, 128>}, {pipeline_mode = #tpu.pipeline_mode<synchronous>, transform_indices = @transform_2, window_bounds = array<i64: 1, 128>}, {pipeline_mode = #tpu.pipeline_mode<synchronous>, transform_indices = @transform_3, window_bounds = array<i64: 128, 128>}, {pipeline_mode = #tpu.pipeline_mode<synchronous>, transform_indices = @transform_4, window_bounds = array<i64: 1, 128>}, {pipeline_mode = #tpu.pipeline_mode<synchronous>, transform_indices = @transform_5, window_bounds = array<i64: 1, 128>}, {pipeline_mode = #tpu.pipeline_mode<synchronous>, transform_indices = @transform_6, window_bounds = array<i64: 1, 128>}, {transform_indices = @transform_7, window_bounds = array<i64: 16, 128>}]} {
    %c0_i32 = arith.constant 0 : i32
    %0 = arith.cmpi eq, %arg1, %c0_i32 : i32
    %1 = arith.extui %0 : i1 to i32
    %c0_i32_0 = arith.constant 0 : i32
    %2 = arith.cmpi ne, %1, %c0_i32_0 : i32
    scf.if %2 {
      %c0_19 = arith.constant 0 : index
      %c0_20 = arith.constant 0 : index
      %28 = vector.load %arg2[%c0_19, %c0_20] : memref<16x128xf32, #tpu.memory_space<vmem>>, vector<16x128xf32>
      %c0_21 = arith.constant 0 : index
      %c0_22 = arith.constant 0 : index
      %29 = vector.load %arg6[%c0_21, %c0_22] : memref<1x128xf32, #tpu.memory_space<vmem>>, vector<1x128xf32>
      %30 = vector.broadcast %29 : vector<1x128xf32> to vector<16x128xf32>
      %31 = arith.addf %28, %30 : vector<16x128xf32>
      %c0_23 = arith.constant 0 : index
      %c0_24 = arith.constant 0 : index
      %32 = vector.load %arg10[%c0_23, %c0_24] : memref<16x128xf32, #tpu.memory_space<vmem>>, vector<16x128xf32>
      tpu.vector_store %arg10[%c0_23, %c0_24], %31 {strides = array<i32>} : memref<16x128xf32, #tpu.memory_space<vmem>>, vector<16x128xf32>,
    } else {
    }
    %c0 = arith.constant 0 : index
    %c0_1 = arith.constant 0 : index
    %3 = vector.load %arg2[%c0, %c0_1] : memref<16x128xf32, #tpu.memory_space<vmem>>, vector<16x128xf32>
    %4 = arith.truncf %3 : vector<16x128xf32> to vector<16x128xbf16>
    %c0_2 = arith.constant 0 : index
    %c0_3 = arith.constant 0 : index
    %5 = vector.load %arg3[%c0_2, %c0_3] : memref<128x128xbf16, #tpu.memory_space<vmem>>, vector<128x128xbf16>
    %cst = arith.constant dense<0.000000e+00> : vector<16x128xf32>
    %6 = tpu.matmul %4, %5, %cst {dimension_numbers = #tpu.dot_dimension_numbers<[1], [0], [0], [1], [0, 0, 1, 1], [], []>} : vector<16x128xbf16>, vector<128x128xbf16>, vector<16x128xf32> -> vector<16x128xf32>
    %c0_4 = arith.constant 0 : index
    %c0_5 = arith.constant 0 : index
    %7 = vector.load %arg4[%c0_4, %c0_5] : memref<1x128xf32, #tpu.memory_space<vmem>>, vector<1x128xf32>
    %8 = vector.broadcast %7 : vector<1x128xf32> to vector<16x128xf32>
    %9 = arith.addf %6, %8 : vector<16x128xf32>
    %cst_6 = arith.constant 3.000000e+00 : f32
    %10 = vector.broadcast %cst_6 : f32 to vector<16x128xf32>
    %11 = arith.addf %9, %10 : vector<16x128xf32>
    %cst_7 = arith.constant 0.000000e+00 : f32
    %cst_8 = arith.constant 6.000000e+00 : f32
    %12 = vector.broadcast %cst_7 : f32 to vector<16x128xf32>
    %13 = arith.maximumf %12, %11 : vector<16x128xf32>
    %14 = vector.broadcast %cst_8 : f32 to vector<16x128xf32>
    %15 = arith.minimumf %14, %13 : vector<16x128xf32>
    %16 = arith.mulf %9, %15 : vector<16x128xf32>
    %cst_9 = arith.constant 0.166666672 : f32
    %17 = vector.broadcast %cst_9 : f32 to vector<16x128xf32>
    %18 = arith.mulf %16, %17 : vector<16x128xf32>
    %19 = arith.truncf %18 : vector<16x128xf32> to vector<16x128xbf16>
    %c0_10 = arith.constant 0 : index
    %c0_11 = arith.constant 0 : index
    %20 = vector.load %arg10[%c0_10, %c0_11] : memref<16x128xf32, #tpu.memory_space<vmem>>, vector<16x128xf32>
    %c0_12 = arith.constant 0 : index
    %c0_13 = arith.constant 0 : index
    %21 = vector.load %arg5[%c0_12, %c0_13] : memref<128x128xbf16, #tpu.memory_space<vmem>>, vector<128x128xbf16>
    %cst_14 = arith.constant dense<0.000000e+00> : vector<16x128xf32>
    %22 = tpu.matmul %19, %21, %cst_14 {dimension_numbers = #tpu.dot_dimension_numbers<[1], [0], [0], [1], [0, 0, 1, 1], [], []>} : vector<16x128xbf16>, vector<128x128xbf16>, vector<16x128xf32> -> vector<16x128xf32>
    %23 = arith.addf %20, %22 : vector<16x128xf32>
    %c0_15 = arith.constant 0 : index
    %c0_16 = arith.constant 0 : index
    %24 = vector.load %arg10[%c0_15, %c0_16] : memref<16x128xf32, #tpu.memory_space<vmem>>, vector<16x128xf32>
    tpu.vector_store %arg10[%c0_15, %c0_16], %23 {strides = array<i32>} : memref<16x128xf32, #tpu.memory_space<vmem>>, vector<16x128xf32>,
    %c0_i32_17 = arith.constant 0 : i32
    %25 = arith.cmpi eq, %arg1, %c0_i32_17 : i32
    %26 = arith.extui %25 : i1 to i32
    %c0_i32_18 = arith.constant 0 : i32
    %27 = arith.cmpi ne, %26, %c0_i32_18 : i32
    scf.if %27 {
      %c0_19 = arith.constant 0 : index
      %c0_20 = arith.constant 0 : index
      %28 = vector.load %arg10[%c0_19, %c0_20] : memref<16x128xf32, #tpu.memory_space<vmem>>, vector<16x128xf32>
      %cst_21 = arith.constant dense<0.000000e+00> : vector<16xf32>
      %29 = vector.multi_reduction <add>, %28, %cst_21 [1] : vector<16x128xf32> to vector<16xf32>
      %30 = vector.shape_cast %29 : vector<16xf32> to vector<16x1xf32>
      %cst_22 = arith.constant 3.125000e-02 : f32
      %31 = vector.broadcast %cst_22 : f32 to vector<16x1xf32>
      %32 = arith.mulf %30, %31 : vector<16x1xf32>
      %33 = vector.broadcast %32 : vector<16x1xf32> to vector<16x128xf32>
      %34 = arith.subf %28, %33 : vector<16x128xf32>
      %35 = tpu.iota {dimensions = array<i32: 1>} : vector<1x128xi32>
      %c32_i32 = arith.constant 32 : i32
      %36 = vector.broadcast %c32_i32 : i32 to vector<1x128xi32>
      %37 = arith.cmpi slt, %35, %36 : vector<1x128xi32>
      %cst_23 = arith.constant 0.000000e+00 : f32
      %38 = vector.shape_cast %37 : vector<1x128xi1> to vector<1x128xi1>
      %39 = vector.broadcast %38 : vector<1x128xi1> to vector<16x128xi1>
      %40 = vector.broadcast %cst_23 : f32 to vector<16x128xf32>
      %41 = arith.select %39, %34, %40 : vector<16x128xi1>, vector<16x128xf32>
      %42 = arith.mulf %41, %41 : vector<16x128xf32>
      %cst_24 = arith.constant dense<0.000000e+00> : vector<16xf32>
      %43 = vector.multi_reduction <add>, %42, %cst_24 [1] : vector<16x128xf32> to vector<16xf32>
      %44 = vector.shape_cast %43 : vector<16xf32> to vector<16x1xf32>
      %cst_25 = arith.constant 3.125000e-02 : f32
      %45 = vector.broadcast %cst_25 : f32 to vector<16x1xf32>
      %46 = arith.mulf %44, %45 : vector<16x1xf32>
      %cst_26 = arith.constant 9.99999996E-13 : f32
      %47 = vector.broadcast %cst_26 : f32 to vector<16x1xf32>
      %48 = arith.addf %46, %47 : vector<16x1xf32>
      %49 = math.rsqrt %48 : vector<16x1xf32>
      %50 = vector.broadcast %49 : vector<16x1xf32> to vector<16x128xf32>
      %51 = arith.mulf %41, %50 : vector<16x128xf32>
      %c0_27 = arith.constant 0 : index
      %c0_28 = arith.constant 0 : index
      %52 = vector.load %arg7[%c0_27, %c0_28] : memref<1x128xf32, #tpu.memory_space<vmem>>, vector<1x128xf32>
      %53 = vector.broadcast %52 : vector<1x128xf32> to vector<16x128xf32>
      %54 = arith.mulf %51, %53 : vector<16x128xf32>
      %c0_29 = arith.constant 0 : index
      %c0_30 = arith.constant 0 : index
      %55 = vector.load %arg8[%c0_29, %c0_30] : memref<1x128xf32, #tpu.memory_space<vmem>>, vector<1x128xf32>
      %56 = vector.broadcast %55 : vector<1x128xf32> to vector<16x128xf32>
      %57 = arith.addf %54, %56 : vector<16x128xf32>
      %c0_31 = arith.constant 0 : index
      %c0_32 = arith.constant 0 : index
      %58 = vector.load %arg9[%c0_31, %c0_32] : memref<16x128xf32, #tpu.memory_space<vmem>>, vector<16x128xf32>
      tpu.vector_store %arg9[%c0_31, %c0_32], %57 {strides = array<i32>} : memref<16x128xf32, #tpu.memory_space<vmem>>, vector<16x128xf32>,
    } else {
    }
    return
  }
  func.func @transform_0(%arg0: i32, %arg1: i32) -> (i32, i32) {
    %c0_i32 = arith.constant 0 : i32
    %c0_i32_0 = arith.constant 0 : i32
    return %arg0, %c0_i32 : i32, i32
  }
  func.func @transform_1(%arg0: i32, %arg1: i32) -> (i32, i32) {
    %c0_i32 = arith.constant 0 : i32
    %c0_i32_0 = arith.constant 0 : i32
    return %c0_i32, %arg1 : i32, i32
  }
  func.func @transform_2(%arg0: i32, %arg1: i32) -> (i32, i32) {
    %c0_i32 = arith.constant 0 : i32
    %c0_i32_0 = arith.constant 0 : i32
    return %c0_i32, %arg1 : i32, i32
  }
  func.func @transform_3(%arg0: i32, %arg1: i32) -> (i32, i32) {
    %c0_i32 = arith.constant 0 : i32
    %c0_i32_0 = arith.constant 0 : i32
    return %arg1, %c0_i32 : i32, i32
  }
  func.func @transform_4(%arg0: i32, %arg1: i32) -> (i32, i32) {
    %c0_i32 = arith.constant 0 : i32
    %c0_i32_0 = arith.constant 0 : i32
    %c0_i32_1 = arith.constant 0 : i32
    return %c0_i32, %c0_i32_0 : i32, i32
  }
  func.func @transform_5(%arg0: i32, %arg1: i32) -> (i32, i32) {
    %c0_i32 = arith.constant 0 : i32
    %c0_i32_0 = arith.constant 0 : i32
    %c0_i32_1 = arith.constant 0 : i32
    return %c0_i32, %c0_i32_0 : i32, i32
  }
  func.func @transform_6(%arg0: i32, %arg1: i32) -> (i32, i32) {
    %c0_i32 = arith.constant 0 : i32
    %c0_i32_0 = arith.constant 0 : i32
    %c0_i32_1 = arith.constant 0 : i32
    return %c0_i32, %c0_i32_0 : i32, i32
  }
  func.func @transform_7(%arg0: i32, %arg1: i32) -> (i32, i32) {
    %c0_i32 = arith.constant 0 : i32
    %c0_i32_0 = arith.constant 0 : i32
    return %arg0, %c0_i32 : i32, i32
  }
}

</mosaic_0001>

<bundles_post_ra>
// kernel: tpu_custom_call.1
= control target key start
LH: loop header
LB: loop body
LE: loop exit
PB: predicated region body
PF: predicated region fallthrough
CT: control target
= control target key end

     0   :  { %12 = vsyncpa [#allocation4], 0  ;;  %s719_s0 = inlined_call_operand.hbm [shape: f32[16,128], index: 0, kind: input, shape index: {}]   ;;  %s720_s1 = inlined_call_operand.hbm [shape: bf16[128,128], index: 1, kind: input, shape index: {}]   ;;  %s721_s2 = inlined_call_operand.vmem [shape: f32[1,128], index: 2, kind: input, shape index: {}]   ;;  %s722_s3 = inlined_call_operand.hbm [shape: bf16[128,128], index: 3, kind: input, shape index: {}]   ;;  %s723_s4 = inlined_call_operand.vmem [shape: f32[1,128], index: 4, kind: input, shape index: {}]   ;;  %s724_s5 = inlined_call_operand.vmem [shape: f32[1,128], index: 5, kind: input, shape index: {}]   ;;  %s725_s6 = inlined_call_operand.vmem [shape: f32[1,128], index: 6, kind: input, shape index: {}]   ;;  %s726_s7 = inlined_call_operand.hbm [shape: f32[16,128], index: 7, kind: output, shape index: {}]  }
   0x1   :  { %13 = vsyncpa [#allocation7], 0 }
   0x2   :  { %14 = vsyncpa [#allocation5], 0  ;;  %s597_s24 = smov [#allocation6]   ;;  %s503_s28 = scalar_lea.hbm %s720_s1, 1024 }
   0x3   :  { %s32_s25 = sshll.u32 %s597_s24, 4  ;;  %p504_p0 = scmp.ne.s32.totalorder %s720_s1, %s503_s28  ;;  %s33_s25 = int_to_ptr.vmem [resolvable:$true] %s32_s25 }
   0x4   :  { %p507_p1 = scmp.lt.u32.totalorder %s503_s28, %s720_s1 }
   0x6   :  { %p509_p2 = pnand %p507_p1, %p504_p0 }
   0x8   :  { %512 = shalt.err (!%p509_p2)
}
   0x9   :  { %s513_s10 = scalar_lea.vmem %s33_s25, 1024  ;;  %p518_p4 = scmp.lt.s32.totalorder %s33_s25, %s33_s25 }
   0xa   :  { %p514_p3 = scmp.ne.s32.totalorder %s33_s25, %s513_s10  ;;  %p519_p5 = scmp.lt.s32.totalorder %s513_s10, %s513_s10 }
   0xc   :  { %p520_p6 = por %p519_p5, %p518_p4 }
   0xe   :  { %p521_p7 = pnand %p520_p6, %p514_p3 }
  0x10   :  { %524 = shalt.err (!%p521_p7)
}
  0x11   :  { %s598_s11 = smov 64   ;;  %s599_s12 = smov 4  }
  0x12   :  { %38 = dma.hbm_to_vmem [thread:$0]  %s720_s1, 1024, %s33_s25, [#allocation7], %s598_s11, %s598_s11, %s599_s12  }
  0x13   :  { %s600_s15 = smov [#allocation3]   ;;  %s525_s19 = scalar_lea.hbm %s719_s0, 256 }
  0x14   :  { %s20_s16 = sshll.u32 %s600_s15, 4  ;;  %p526_p8 = scmp.ne.s32.totalorder %s719_s0, %s525_s19  ;;  %s21_s16 = int_to_ptr.vmem [resolvable:$true] %s20_s16 }
  0x15   :  { %p529_p9 = scmp.lt.u32.totalorder %s525_s19, %s719_s0 }
  0x17   :  { %p531_p10 = pnand %p529_p9, %p526_p8 }
  0x19   :  { %534 = shalt.err (!%p531_p10)
}
  0x1a   :  { %s535_s24 = scalar_lea.vmem %s21_s16, 256  ;;  %p540_p12 = scmp.lt.s32.totalorder %s21_s16, %s21_s16 }
  0x1b   :  { %p536_p11 = scmp.ne.s32.totalorder %s21_s16, %s535_s24  ;;  %p541_p13 = scmp.lt.s32.totalorder %s535_s24, %s535_s24 }
  0x1d   :  { %p542_p0 = por %p541_p13, %p540_p12 }
  0x1f   :  { %p543_p1 = pnand %p542_p0, %p536_p11 }
  0x21   :  { %546 = shalt.err (!%p543_p1)
}
  0x22   :  { %s601_s1 = smov 128   ;;  %s602_s25 = smov 8  }
  0x23   :  { %26 = dma.hbm_to_vmem [thread:$0]  %s719_s0, 256, %s21_s16, [#allocation4], %s601_s1, %s601_s1, %s602_s25  }
  0x24   :  { %s603_s28 = smov [#allocation8]   ;;  %s547_s9 = scalar_lea.hbm %s722_s3, 1024 }
  0x25   :  { %s46_s29 = sshll.u32 %s603_s28, 4  ;;  %p548_p2 = scmp.ne.s32.totalorder %s722_s3, %s547_s9  ;;  %s47_s29 = int_to_ptr.vmem [resolvable:$true] %s46_s29 }
  0x26   :  { %p551_p3 = scmp.lt.u32.totalorder %s547_s9, %s722_s3 }
  0x28   :  { %p553_p4 = pnand %p551_p3, %p548_p2 }
  0x2a   :  { %556 = shalt.err (!%p553_p4)
}
  0x2b   :  { %s557_s17 = scalar_lea.vmem %s47_s29, 1024  ;;  %p562_p6 = scmp.lt.s32.totalorder %s47_s29, %s47_s29 }
  0x2c   :  { %p558_p5 = scmp.ne.s32.totalorder %s47_s29, %s557_s17  ;;  %p563_p7 = scmp.lt.s32.totalorder %s557_s17, %s557_s17 }
  0x2e   :  { %p564_p8 = por %p563_p7, %p562_p6 }
  0x30   :  { %p565_p9 = pnand %p564_p8, %p558_p5 }
  0x32   :  { %568 = shalt.err (!%p565_p9)
}
  0x33   :  { %52 = dma.hbm_to_vmem [thread:$0]  %s722_s3, 1024, %s47_s29, [#allocation7], %s598_s11, %s598_s11, %s599_s12  }
  0x34   :  { %591 = dma.done.wait [#allocation4], 256  }
  0x35   :  { %592 = vsyncadd [#allocation4], 4294967040 }
  0x36   :  { %593 = dma.done.wait [#allocation7], 2048  }
  0x37   :  { %594 = vsyncadd [#allocation7], 4294965248  ;;  %v604_v0 = vmov 0.0   ;;  %vm605_vm0 = vmmov 0   ;;  %v483_v1 = vld [vmem:[#allocation6] sm:$0xff]   ;;  %v484_v2 = vld [vmem:[#allocation6 + $0x8] sm:$0xff]   ;;  %v336_v47 = vlaneseq }
  0x38   :  { %433 = vmatprep.subr.bf16.mxu0 %v604_v0  ;;  %449 = vmatprep.mubr.msk.bf16.mxu0 %vm605_vm0, %v604_v0  ;;  %v485_v3 = vld [vmem:[#allocation6 + $0x10] sm:$0xff]   ;;  %v491_v4 = vld [vmem:[#allocation8] sm:$0xff]   ;;  %v486_v5 = vld [vmem:[#allocation6 + $0x18] sm:$0xff]   ;;  %s606_s21 = smov [#allocation9]  }
  0x39   :  { %453 = vmatprep.subr.bf16.mxu1 %v604_v0  ;;  %469 = vmatprep.mubr.msk.bf16.mxu1 %vm605_vm0, %v604_v0  ;;  %v492_v6 = vld [vmem:[#allocation8 + $0x8] sm:$0xff]   ;;  %v487_v7 = vld [vmem:[#allocation6 + $0x20] sm:$0xff]   ;;  %v493_v8 = vld [vmem:[#allocation8 + $0x10] sm:$0xff]   ;;  %v337_v48 = vand.u32 127, %v336_v47  ;;  %s382_s22 = sshll.u32 %s606_s21, 4  ;;  %s383_s22 = int_to_ptr.vmem [resolvable:$true] %s382_s22 }
  0x3a   :  { %434 = vmatpush3.bf16.msra.mxu0 %v483_v1  ;;  %454 = vmatpush3.bf16.msra.mxu1 %v491_v4  ;;  %v488_v9 = vld [vmem:[#allocation6 + $0x28] sm:$0xff]   ;;  %v494_v10 = vld [vmem:[#allocation8 + $0x18] sm:$0xff]   ;;  %v489_v11 = vld [vmem:[#allocation6 + $0x30] sm:$0xff]   ;;  %s569_s23 = scalar_lea.vmem %s383_s22, 256  ;;  %p574_p11 = scmp.lt.s32.totalorder %s383_s22, %s383_s22 }
  0x3b   :  { %435 = vmatprep.subr.bf16.mxu0 %v604_v0  ;;  %455 = vmatprep.subr.bf16.mxu1 %v604_v0  ;;  %v490_v12 = vld [vmem:[#allocation6 + $0x38] sm:$0xff]   ;;  %v86_v13 = vld [vmem:[#allocation3] sm:$0xff]  ;;  %v495_v16 = vld [vmem:[#allocation8 + $0x20] sm:$0xff]   ;;  %vm338_vm1 = vcmp.lt.s32.totalorder %v337_v48, 32  ;;  %p570_p10 = scmp.ne.s32.totalorder %s383_s22, %s569_s23  ;;  %p575_p12 = scmp.lt.s32.totalorder %s569_s23, %s569_s23 }
  0x3c   :  { %v87_v14 = vld [vmem:[#allocation3 + $0x8] sm:$0xff]  ;;  %v496_v17 = vld [vmem:[#allocation8 + $0x28] sm:$0xff]   ;;  %v497_v18 = vld [vmem:[#allocation8 + $0x30] sm:$0xff]  }
  0x3d   :  { %v88_v15 = vpack.c.bf16 %v87_v14, %v86_v13  ;;  %v498_v19 = vld [vmem:[#allocation8 + $0x38] sm:$0xff]   ;;  %v396_v20 = vld [vmem:[%s721_s2] ss:$0 sm:$0xff]  ;;  %p576_p13 = por %p575_p12, %p574_p11 }
  0x3e   :  { %436 = vmatpush3.bf16.msra.mxu0 %v484_v2  ;;  %456 = vmatpush3.bf16.msra.mxu1 %v492_v6  ;;  %v395_v38 = vld [vmem:[%s723_s4] ss:$0 sm:$0xff] }
  0x3f   :  { %437 = vmatprep.subr.bf16.mxu0 %v604_v0  ;;  %457 = vmatprep.subr.bf16.mxu1 %v604_v0  ;;  %v82_v39 = vadd.f32 %v395_v38, %v86_v13  ;;  %v83_v43 = vadd.f32 %v395_v38, %v87_v14  ;;  %v413_v2 = vld [vmem:[%s724_s5] ss:$0 sm:$0xff]  ;;  %p577_p0 = pnand %p576_p13, %p570_p10 }
  0x40   :  { %v414_v4 = vld [vmem:[%s725_s6] ss:$0 sm:$0xff] }
  0x42   :  { %438 = vmatpush3.bf16.msra.mxu0 %v485_v3  ;;  %458 = vmatpush3.bf16.msra.mxu1 %v493_v8 }
  0x43   :  { %439 = vmatprep.subr.bf16.mxu0 %v604_v0  ;;  %459 = vmatprep.subr.bf16.mxu1 %v604_v0 }
  0x46   :  { %440 = vmatpush3.bf16.msra.mxu0 %v486_v5  ;;  %460 = vmatpush3.bf16.msra.mxu1 %v494_v10 }
  0x47   :  { %441 = vmatprep.subr.bf16.mxu0 %v604_v0  ;;  %461 = vmatprep.subr.bf16.mxu1 %v604_v0 }
  0x4a   :  { %442 = vmatpush3.bf16.msra.mxu0 %v487_v7  ;;  %462 = vmatpush3.bf16.msra.mxu1 %v495_v16 }
  0x4b   :  { %443 = vmatprep.subr.bf16.mxu0 %v604_v0  ;;  %463 = vmatprep.subr.bf16.mxu1 %v604_v0 }
  0x4e   :  { %444 = vmatpush3.bf16.msra.mxu0 %v488_v9  ;;  %464 = vmatpush3.bf16.msra.mxu1 %v496_v17 }
  0x4f   :  { %445 = vmatprep.subr.bf16.mxu0 %v604_v0  ;;  %465 = vmatprep.subr.bf16.mxu1 %v604_v0 }
  0x52   :  { %446 = vmatpush3.bf16.msra.mxu0 %v489_v11  ;;  %466 = vmatpush3.bf16.msra.mxu1 %v497_v18 }
  0x53   :  { %447 = vmatprep.subr.bf16.mxu0 %v604_v0  ;;  %467 = vmatprep.subr.bf16.mxu1 %v604_v0 }
  0x56   :  { %448 = vmatpush3.bf16.msra.mxu0 %v490_v12  ;;  %468 = vmatpush3.bf16.msra.mxu1 %v498_v19 }
  0x59   :  { %450 = vmatmul.mubr.bf16.vlgmr.msra.gmra.mrb[0].mxu0 %v88_v15 }
 0x12c   :  { %v194_v21 = vpop.f32.mrb[0].mxu0 }
 0x12d   :  { %v195_v22 = vadd.f32 %v396_v20, %v194_v21  ;;  %v451_v23 = vpop.f32.mrb[1].mxu0 }
 0x12e   :  { %v197_v24 = vpop.f32.mrb[2].mxu0 }
 0x12f   :  { %v201_v25 = vadd.f32 3.0, %v195_v22  ;;  %v198_v26 = vadd.f32 %v396_v20, %v197_v24  ;;  %v452_v27 = vpop.f32.mrb[3].mxu0 }
 0x131   :  { %v203_v28 = vmax.f32 %v201_v25, 0.0  ;;  %v202_v29 = vadd.f32 3.0, %v198_v26 }
 0x133   :  { %v205_v30 = vmin.f32 %v203_v28, 6.0  ;;  %v204_v31 = vmax.f32 %v202_v29, 0.0 }
 0x135   :  { %v207_v32 = vmul.f32 %v205_v30, %v195_v22  ;;  %v206_v33 = vmin.f32 %v204_v31, 6.0 }
 0x137   :  { %v208_v34 = vmul.f32 %v206_v33, %v198_v26  ;;  %v209_v35 = vmul.f32 0.16666667, %v207_v32 }
 0x139   :  { %v210_v36 = vmul.f32 0.16666667, %v208_v34 }
 0x13b   :  { %v211_v37 = vpack.c.bf16 %v210_v36, %v209_v35 }
 0x13d   :  { %470 = vmatmul.mubr.bf16.vlgmr.msra.gmra.mrb[0].mxu1 %v211_v37 }
 0x210   :  { %v312_v40 = vpop.f32.mrb[0].mxu1 }
 0x211   :  { %v319_v41 = vadd.f32 %v312_v40, %v82_v39  ;;  %v471_v42 = vpop.f32.mrb[1].mxu1 }
 0x212   :  { %v315_v44 = vpop.f32.mrb[2].mxu1 }
 0x213   :  { %v472_v45 = vpop.f32.mrb[3].mxu1  ;;  %328 = vadd.xlane.f32.xlu0 %v319_v41  ;;  %v320_v46 = vadd.f32 %v315_v44, %v83_v43 }
 0x217   :  { %330 = vadd.xlane.f32.xlu0 %v320_v46 }
 0x2a0   :  { %v329_v49 = vpop.xlane.xlu0 %328 }
 0x2a1   :  { %v332_v50 = vmul.f32 0.03125, %v329_v49 }
 0x2a3   :  { %v334_v51 = vsub.f32 %v319_v41, %v332_v50 }
 0x2a4   :  { %v331_v52 = vpop.xlane.xlu0 %330 }
 0x2a5   :  { %v333_v53 = vmul.f32 0.03125, %v331_v52  ;;  %v341_v54 = vsel %vm338_vm1, %v334_v51, 0.0 }
 0x2a6   :  { %v343_v55 = vmul.f32 %v341_v54, %v341_v54 }
 0x2a7   :  { %v335_v56 = vsub.f32 %v320_v46, %v333_v53 }
 0x2a8   :  { %345 = vadd.xlane.f32.xlu1 %v343_v55 }
 0x2a9   :  { %v342_v57 = vsel %vm338_vm1, %v335_v56, 0.0 }
 0x2aa   :  { %v344_v58 = vmul.f32 %v342_v57, %v342_v57 }
 0x2ac   :  { %347 = vadd.xlane.f32.xlu1 %v344_v58 }
 0x335   :  { %v346_v59 = vpop.xlane.xlu1 %345 }
 0x336   :  { %v349_v60 = vmul.f32 0.03125, %v346_v59 }
 0x338   :  { %v351_v61 = vadd.f32 1e-12, %v349_v60 }
 0x339   :  { %v348_v62 = vpop.xlane.xlu1 %347 }
 0x33a   :  { %499 = vrsqrt.f32 %v351_v61  ;;  %v350_v63 = vmul.f32 0.03125, %v348_v62 }
 0x33c   :  { %v352_v0 = vadd.f32 1e-12, %v350_v63 }
 0x33e   :  { %501 = vrsqrt.f32 %v352_v0 }
 0x344   :  { %v500_v1 = vpop.eup %499 }
 0x345   :  { %v355_v3 = vmul.f32 %v500_v1, %v341_v54 }
 0x347   :  { %v364_v5 = vmul.f32 %v413_v2, %v355_v3 }
 0x348   :  { %v502_v6 = vpop.eup %501 }
 0x349   :  { %v356_v7 = vmul.f32 %v502_v6, %v342_v57  ;;  %v373_v8 = vadd.f32 %v414_v4, %v364_v5 }
 0x34b   :  { %v365_v9 = vmul.f32 %v413_v2, %v356_v7  ;;  %375 = vst [vmem:[#allocation9] sm:$0xff] %v373_v8 }
 0x34d   :  { %v374_v10 = vadd.f32 %v414_v4, %v365_v9 }
 0x34f   :  { %376 = vst [vmem:[#allocation9 + $0x8] sm:$0xff] %v374_v10 }
 0x350   :  { %580 = shalt.err (!%p577_p0)
}
 0x351   :  { %s581_s24 = scalar_lea.hbm %s726_s7, 256 }
 0x352   :  { %p582_p1 = scmp.ne.s32.totalorder %s726_s7, %s581_s24  ;;  %p585_p2 = scmp.lt.u32.totalorder %s581_s24, %s726_s7 }
 0x354   :  { %p587_p3 = pnand %p585_p2, %p582_p1 }
 0x356   :  { %590 = shalt.err (!%p587_p3)
}
 0x357   :  { %388 = dma.vmem_to_hbm [thread:$0]  %s383_s22, 256, %s726_s7, [#allocation5], %s601_s1, %s601_s1, %s602_s25  }
 0x358   :  { %595 = dma.done.wait [#allocation5], 256  }
 0x359   :  { %596 = vsyncadd [#allocation5], 4294967040 }
 0x35a   :  { %392 = vsyncpa [#allocation4], 1 }
 0x35b   :  { %393 = vsyncpa [#allocation7], 1 }
 0x35c   :  { %394 = vsyncpa [#allocation5], 1 }

</bundles_post_ra>
